<compile_context>
chip_gen: v7x
topology: tpu7x:2x2x1
jax: 0.10.0
libtpu: 0.0.40
codegen_flags: <defaults>
</compile_context>

<pallas_src>
import jax
import jax.numpy as jnp
from jax.experimental import pallas as pl
from jax.experimental.pallas import tpu as pltpu


def add_inverse_kernel(x_ref, o_ref):
    # x_ref: (TB, TR, C) block; o_ref: (TB, 2, TR, C) block.
    # The last two dims of both blocks are (TR, C) with C == 128 (or the full
    # trailing extent), so both slab stores below are dense, unmasked vst
    # streams; the size-2 "half" axis is a non-minor dim (no sublane padding).
    x = x_ref[...]
    o_ref[:, 0, :, :] = x
    o_ref[:, 1, :, :] = (1 - x).astype(o_ref.dtype)


def _cdiv(a, b):
    return -(-a // b)


def _round_up(a, m):
    return _cdiv(a, m) * m


def _vmem_capacity_bytes():
    """Physical VMEM of the current TPU generation (conservative fallback)."""
    try:
        return int(pltpu.get_tpu_info().vmem_capacity_bytes)
    except Exception:
        return 64 * 1024 * 1024  # v7x per-TC VMEM; safe lower bound everywhere


def add_inverse(x):
    """AddInverse forward: concat([x, 1 - x], axis=1). x is NCHW."""
    b, c, h, w = x.shape
    n = c * h * w
    itemsize = x.dtype.itemsize

    # --- layout: lane-dense (rows, 128) view per batch element when possible ---
    if n % 128 == 0:
        cols, rows = 128, n // 128
    else:
        # Fallback: keep the whole flattened feature axis as the lane dim
        # (full-extent trailing dims are always legal block dims).
        cols, rows = n, 1
    x3 = x.reshape(b, rows, cols)

    # --- generation- and dtype-aware tile sizing ---
    vmem_cap = _vmem_capacity_bytes()
    # Double-buffered working set = 2*(input tile) + 2*(output tile = 2x input)
    # = 6 * input_tile_bytes.  Target ~1/3 of physical VMEM for that set:
    #   v7x (64 MiB)  -> ~3.6 MiB input tiles (~930K f32 elems)
    #   v5e/v6e (128) -> ~7.1 MiB input tiles (~1.8M f32 elems)
    target_tile_bytes = max(vmem_cap // 18, 1 << 20)
    max_tile_elems = max(target_tile_bytes // itemsize, 8 * 128)

    # Row tiling: multiple of 8 sublanes, balanced across tiles.
    if cols == 128 and rows > 8:
        max_rows = max(8, (max_tile_elems // cols) // 8 * 8)
        if rows <= max_rows:
            tile_rows = rows
        else:
            n_row_tiles = _cdiv(rows, max_rows)
            tile_rows = _round_up(_cdiv(rows, n_row_tiles), 8)
    else:
        tile_rows = rows
    n_row_tiles = _cdiv(rows, tile_rows)

    # Batch blocking: only when a single (tile_rows, cols) step is small
    # relative to the byte budget (small feature maps, larger batches).
    tile_b = 1
    if n_row_tiles == 1 and b > 1:
        step_elems = tile_rows * cols
        max_tile_b = max(1, max_tile_elems // step_elems)
        max_tile_b = min(max_tile_b, _cdiv(b, 2))  # keep >= 2 steps for megacore
        n_b_tiles = _cdiv(b, max_tile_b)
        tile_b = _cdiv(b, n_b_tiles)               # balanced batch tiles
    n_b_tiles = _cdiv(b, tile_b)

    # If a single large step remains (b == 1 and everything fits one tile),
    # split the rows so both TensorCores get work on megacore parts.
    if n_b_tiles * n_row_tiles == 1 and cols == 128 and rows >= 16:
        tile_rows = _round_up(_cdiv(rows, 2), 8)
        n_row_tiles = _cdiv(rows, tile_rows)

    in_tile_bytes = tile_b * tile_rows * cols * itemsize
    working_set_bytes = 6 * in_tile_bytes  # double-buffered in + out
    vmem_limit_bytes = min(vmem_cap * 5 // 8,
                           max(32 << 20, working_set_bytes * 3 // 2))

    out4 = pl.pallas_call(
        add_inverse_kernel,
        out_shape=jax.ShapeDtypeStruct((b, 2, rows, cols), x.dtype),
        grid=(n_b_tiles, n_row_tiles),
        in_specs=[
            pl.BlockSpec((tile_b, tile_rows, cols), lambda i, j: (i, j, 0)),
        ],
        out_specs=pl.BlockSpec((tile_b, 2, tile_rows, cols),
                               lambda i, j: (i, 0, j, 0)),
        compiler_params=pltpu.CompilerParams(
            dimension_semantics=("parallel", "parallel"),
            vmem_limit_bytes=vmem_limit_bytes,
        ),
        cost_estimate=pl.CostEstimate(
            flops=x.size,                                  # one subtract / elem
            transcendentals=0,
            bytes_accessed=3 * x.size * itemsize,          # read x, write 2x
        ),
    )(x3)

    # Channel-concat in NCHW is contiguous per batch element, so reshaping the
    # (B, 2, rows, 128) result back to (B, 2C, H, W) is a free metadata op.
    return out4.reshape(b, 2 * c, h, w)


if __name__ == "__main__":
    key = jax.random.PRNGKey(0)
    x = jax.random.uniform(key, (2, 4, 16, 16), dtype=jnp.float32)

    out = add_inverse(x)
    jax.block_until_ready(out)

    # Verify against plain-JAX reference (torch.cat([x, 1 - x], dim=1)).
    ref = jnp.concatenate([x, 1.0 - x], axis=1)
    assert out.shape == (2, 8, 16, 16)
    assert out.dtype == x.dtype
    assert jnp.allclose(out, ref, atol=1e-6), "mismatch vs reference"

    print("KERNEL_OK")
</pallas_src>

<mosaic_0001>
module attributes {stable_mosaic.version = 11 : i64} {
  func.func @add_inverse_kernel(%arg0: i32, %arg1: i32, %arg2: memref<1x8x128xf32, #tpu.memory_space<vmem>>, %arg3: memref<1x2x8x128xf32, #tpu.memory_space<vmem>>) attributes {dimension_semantics = [#tpu.dimension_semantics<parallel>, #tpu.dimension_semantics<parallel>], iteration_bounds = array<i64: 2, 1>, scalar_prefetch = 0 : i64, scratch_operands = 0 : i64, tpu.core_type = #tpu.core_type<tc>, window_params = [{transform_indices = @transform_0, window_bounds = array<i64: 1, 8, 128>}, {transform_indices = @transform_1, window_bounds = array<i64: 1, 2, 8, 128>}]} {
    %c0 = arith.constant 0 : index
    %c0_0 = arith.constant 0 : index
    %c0_1 = arith.constant 0 : index
    %0 = vector.load %arg2[%c0, %c0_0, %c0_1] : memref<1x8x128xf32, #tpu.memory_space<vmem>>, vector<1x8x128xf32>
    %c0_2 = arith.constant 0 : index
    %c0_3 = arith.constant 0 : index
    %c0_4 = arith.constant 0 : index
    %c0_5 = arith.constant 0 : index
    %1 = vector.load %arg3[%c0_2, %c0_3, %c0_4, %c0_5] : memref<1x2x8x128xf32, #tpu.memory_space<vmem>>, vector<1x1x8x128xf32>
    %2 = vector.shape_cast %1 : vector<1x1x8x128xf32> to vector<1x8x128xf32>
    %3 = vector.shape_cast %0 : vector<1x8x128xf32> to vector<1x1x8x128xf32>
    tpu.vector_store %arg3[%c0_2, %c0_3, %c0_4, %c0_5], %3 {strides = array<i32>} : memref<1x2x8x128xf32, #tpu.memory_space<vmem>>, vector<1x1x8x128xf32>,
    %cst = arith.constant 1.000000e+00 : f32
    %4 = vector.broadcast %cst : f32 to vector<1x8x128xf32>
    %5 = arith.subf %4, %0 : vector<1x8x128xf32>
    %c0_6 = arith.constant 0 : index
    %c1 = arith.constant 1 : index
    %c0_7 = arith.constant 0 : index
    %c0_8 = arith.constant 0 : index
    %6 = vector.load %arg3[%c0_6, %c1, %c0_7, %c0_8] : memref<1x2x8x128xf32, #tpu.memory_space<vmem>>, vector<1x1x8x128xf32>
    %7 = vector.shape_cast %6 : vector<1x1x8x128xf32> to vector<1x8x128xf32>
    %8 = vector.shape_cast %5 : vector<1x8x128xf32> to vector<1x1x8x128xf32>
    tpu.vector_store %arg3[%c0_6, %c1, %c0_7, %c0_8], %8 {strides = array<i32>} : memref<1x2x8x128xf32, #tpu.memory_space<vmem>>, vector<1x1x8x128xf32>,
    return
  }
  func.func @transform_0(%arg0: i32, %arg1: i32) -> (i32, i32, i32) {
    %c0_i32 = arith.constant 0 : i32
    %c0_i32_0 = arith.constant 0 : i32
    return %arg0, %arg1, %c0_i32 : i32, i32, i32
  }
  func.func @transform_1(%arg0: i32, %arg1: i32) -> (i32, i32, i32, i32) {
    %c0_i32 = arith.constant 0 : i32
    %c0_i32_0 = arith.constant 0 : i32
    %c0_i32_1 = arith.constant 0 : i32
    return %arg0, %c0_i32, %arg1, %c0_i32_0 : i32, i32, i32, i32
  }
}

</mosaic_0001>

<bundles_post_ra>
// kernel: tpu_custom_call.1
= control target key start
LH: loop header
LB: loop body
LE: loop exit
PB: predicated region body
PF: predicated region fallthrough
CT: control target
= control target key end

     0   :  { %6 = vsyncpa [#allocation3], 0  ;;  %s636_s0 = inlined_call_operand.hbm [shape: f32[2,8,128], index: 0, kind: input, shape index: {}]   ;;  %s637_s1 = inlined_call_operand.hbm [shape: f32[2,2,8,128], index: 1, kind: output, shape index: {}]  }
   0x1   :  { %8 = vsyncpa [#allocation3 + $0x1], 0 }
   0x2   :  { %9 = vsyncpa [#allocation4], 0 }
   0x3   :  { %11 = vsyncpa [#allocation4 + $0x1], 0  ;;  %s461_s6 = smov 0   ;;  %s463_s7 = smov 0  }
   0x4   :  { %s465_s8 = smov 0   ;;  %s467_s9 = smov 0  }
   0x5   :  { %s469_s10 = smov 0   ;;  %s471_s11 = smov 0  }
   0x6 LB: > { %s253_s12 = sadd.s32 4294967295, %s445_s11   ;;  %s254_s13 = sadd.s32 4294967294, %s445_s11   ;;  %s445_s11 = sphi %s471_s11, %s17_s11   ;;  %s441_s10 = sphi %s469_s10, %s653_s10   ;;  %s437_s9 = sphi %s467_s9, %s652_s9   ;;  %s433_s8 = sphi %s465_s8, %s651_s8   ;;  %s429_s7 = sphi %s463_s7, %s650_s7   ;;  %s425_s6 = sphi %s461_s6, %s649_s6  }
   0x7   : > { %s29_s14 = sadd.s32 1, %s441_s10  ;;  %s38_s15 = sadd.s32 1, %s433_s8 }
   0x8   : > { %p31_p0 = scmp.ge.s32.totalorder %s29_s14, 2  ;;  %p45_p1 = scmp.ne.s32.totalorder %s433_s8, %s429_s7 }
   0x9   : > { %p46_p2 = scmp.eq.s32.totalorder %s445_s11, 0  ;;  %p51_p3 = scmp.ne.s32.totalorder %s429_s7, %s425_s6 }
   0xa   : > { %s655_s14 = smov (%p31_p0, %s29_s14), 0  ;;  %p52_p5 = scmp.eq.s32.totalorder %s253_s12, 0 }
   0xb   : > { %p502_p4 = por %p46_p2, %p45_p1  ;;  %s33_s17 = ssub.s32 %s441_s10, %s655_s14 }
   0xc   : > { %p77_p6 = scmp.eq.s32.totalorder %s253_s12, 1  ;;  %p36_p7 = scmp.eq.s32.totalorder %s33_s17, 0 }
   0xd   : > { %p508_p8 = por %p52_p5, %p51_p3  ;;  %p83_p10 = scmp.eq.s32.totalorder %s254_s13, 1 }
   0xe   : > { %p512_p9 = por %p77_p6, %p45_p1  ;;  %p281_p13 = scmp.lt.s32.totalorder %s445_s11, 2 }
   0xf   : > { %s517_s20 = scalar_select %p36_p7, %s433_s8, %s38_s15  }
  0x10   : > { %s641_s19 = scalar_select %p512_p9, 1, 0 }
  0x11   : > { %p519_p11 = por %p83_p10, %p51_p3  ;;  %s103_s22 = sand.u32 1, %s433_s8  }
  0x12   : > { %s257_s23 = sshll.u32 %s103_s22, 3  ;;  %s258_s24 = sshll.u32 %s441_s10, 7 }
  0x13   : > { %s642_s21 = scalar_select %p519_p11, 1, 0 }
  0x14   : > { %s530_s27 = scalar_lea.hbm %s636_s0, %s258_s24  ;;  %s107_s28 = scalar_lea.vmem [#allocation2], %s257_s23 }
  0x15   : > { %s115_s29 = sshll.u32 %s107_s28, 4  ;;  %p536_p0 = pnand %p281_p13, %p502_p4  ;;  %s532_s29 = int_to_ptr.vmem [resolvable:$true] %s115_s29 }
  0x16   : > { %s104_s2 = scalar_lea.sflag [#allocation3], %s103_s22  ;;  %s333_s3 = scalar_lea.hbm %s530_s27, 128 }
  0x17   : > { %p334_p3 = scmp.ne.s32.totalorder %s530_s27, %s333_s3  ;;  %p335_p5 = pneg %p536_p0 }
  0x18   : > { %s338_s12 = scalar_lea.hbm %s636_s0, 256  ;;  %p339_p4 = scmp.lt.u32.totalorder %s530_s27, %s636_s0 }
  0x19   : > { %p336_p6 = pnand %p335_p5, %p334_p3  ;;  %p340_p10 = scmp.lt.u32.totalorder %s338_s12, %s333_s3 }
  0x1a   : > { %p342_p12 = scmp.lt.u32.totalorder %s333_s3, %s530_s27 }
  0x1b   : > { %p337_p7 = pneg %p336_p6  ;;  %p341_p13 = por %p340_p10, %p339_p4 }
  0x1d   : > { %p343_p1 = por %p342_p12, %p341_p13 }
  0x1f   : > { %p344_p2 = pnand %p343_p1, %p337_p7 }
  0x21   : > { %347 = shalt.err (!%p344_p2)
}
  0x22   : > { %s348_s16 = scalar_lea.vmem %s532_s29, 128  ;;  %s447_s17 = smov [#allocation2]  }
  0x23   : > { %p349_p3 = scmp.ne.s32.totalorder %s532_s29, %s348_s16  ;;  %s353_s22 = sshll.u32 %s447_s17, 4  ;;  %s354_s22 = int_to_ptr.vmem [resolvable:$false] %s353_s22 }
  0x24   : > { %s355_s23 = scalar_lea.vmem %s354_s22, 256  ;;  %p356_p9 = scmp.lt.s32.totalorder %s532_s29, %s354_s22 }
  0x25   : > { %p351_p6 = pnand %p349_p3, %p335_p5  ;;  %p357_p4 = scmp.lt.s32.totalorder %s355_s23, %s348_s16 }
  0x27   : > { %p352_p11 = pneg %p351_p6  ;;  %p358_p10 = por %p357_p4, %p356_p9 }
  0x29   : > { %p359_p12 = pnand %p358_p10, %p352_p11 }
  0x2b   : > { %362 = shalt.err (!%p359_p12)
}
  0x2c   : > { %276 = dma.hbm_to_vmem [thread:$0]  (!%p536_p0), %s530_s27, 128, %s532_s29, %s104_s2  }
  0x2d   : > { %p644_p1 = scmp.lt.s32.totalorder %s445_s11, 3  ;;  %p645_p2 = scmp.ge.s32.totalorder %s445_s11, 1 }
  0x2f   : > { %p121_p5 = pnand %p645_p2, %p644_p1 }
  0x30   : > { %s572_s24 = sand.u32 (!%p121_p5), 1, %s429_s7  }
  0x31   : > { %124 = sbr.rel (%p121_p5) target bundleno = 84 (0x54), region = 24  ;;  %s260_s25 = sshll.u32 (!%p121_p5), %s572_s24, 3 }
  0x32   : > { %s127_s26 = scalar_lea.sflag (!%p121_p5), [#allocation3], %s572_s24  ;;  %s130_s28 = scalar_lea.vmem (!%p121_p5), [#allocation2], %s260_s25 }
  0x38   : > { %416 = dma.done.wait (%p508_p8), %s127_s26, 128  }
  0x39   : > { %418 = vsyncadd (%p508_p8), %s127_s26, 4294967168  ;;  %s261_s27 = sshll.u32 %s572_s24, 4  ;;  %s268_s2 = sshll.u32 %s437_s9, 8  ;;  %v149_v0 = vld [vmem:[%s130_s28] sm:$0xff] }
  0x3a   : > { %s148_s29 = scalar_lea.vmem [#allocation5], %s261_s27  ;;  %s587_s5 = scalar_lea.hbm %s637_s1, %s268_s2  ;;  %v151_v1 = vsub.f32 1.0, %v149_v0 }
  0x3b   : > { %s169_s30 = sshll.u32 %s148_s29, 4  ;;  %150 = vst [vmem:[%s148_s29] sm:$0xff] %v149_v0  ;;  %s155_s18 = scalar_lea.sflag [#allocation4], %s572_s24  ;;  %s582_s30 = int_to_ptr.vmem [resolvable:$true] %s169_s30 }
  0x3c   : > { %262 = vst [vmem:[%s148_s29 + $0x8] sm:$0xff] %v151_v1  ;;  %s363_s12 = scalar_lea.vmem %s582_s30, 256  ;;  %p646_p9 = scmp.ne.s32.totalorder %s641_s19, 0 }
  0x3d   : > { %p364_p8 = scmp.ne.s32.totalorder %s582_s30, %s363_s12  ;;  %s448_s9 = smov [#allocation5]  }
  0x3e   : > { %s367_s13 = sshll.u32 %s448_s9, 4  ;;  %s368_s13 = int_to_ptr.vmem [resolvable:$false] %s367_s13 }
  0x3f   : > { %p365_p11 = pnand %p364_p8, %p646_p9  ;;  %s369_s15 = scalar_lea.vmem %s368_s13, 512 }
  0x40   : > { %p370_p7 = scmp.lt.s32.totalorder %s582_s30, %s368_s13  ;;  %p371_p13 = scmp.lt.s32.totalorder %s369_s15, %s363_s12 }
  0x41   : > { %p366_p0 = pneg %p365_p11 }
  0x42   : > { %p372_p3 = por %p371_p13, %p370_p7 }
  0x44   : > { %p373_p6 = pnand %p372_p3, %p366_p0 }
  0x46   : > { %376 = shalt.err (!%p373_p6)
}
  0x47   : > { %s377_s16 = scalar_lea.hbm %s587_s5, 256  ;;  %s381_s23 = scalar_lea.hbm %s637_s1, 512 }
  0x48   : > { %p378_p4 = scmp.ne.s32.totalorder %s587_s5, %s377_s16  ;;  %p382_p1 = scmp.lt.u32.totalorder %s587_s5, %s637_s1 }
  0x49   : > { %p383_p2 = scmp.lt.u32.totalorder %s381_s23, %s377_s16  ;;  %p385_p8 = scmp.lt.u32.totalorder %s377_s16, %s587_s5 }
  0x4a   : > { %p379_p10 = pnand %p378_p4, %p646_p9 }
  0x4b   : > { %p384_p5 = por %p383_p2, %p382_p1 }
  0x4c   : > { %p380_p12 = pneg %p379_p10 }
  0x4d   : > { %p386_p11 = por %p385_p8, %p384_p5 }
  0x4f   : > { %p387_p0 = pnand %p386_p11, %p380_p12 }
  0x51   : > { %390 = shalt.err (!%p387_p0)
}
  0x52   : > { %s449_s28 = smov 128   ;;  %s450_s27 = smov 8  }
  0x53   : > { %271 = dma.vmem_to_hbm [thread:$0]  (%p646_p9), %s582_s30, 256, %s587_s5, %s155_s18, %s449_s28, %s449_s28, %s450_s27  }
  0x54 PF: > { %s184_s29 = sand.u32 1, %s425_s6   ;;  %p647_p7 = scmp.ne.s32.totalorder %s642_s21, 0 }
  0x55   : > { %p648_p13 = scmp.ge.s32.totalorder %s445_s11, 2  ;;  %s185_s2 = scalar_lea.sflag [#allocation4], %s184_s29 }
  0x57   : > { %p278_p3 = pnand %p648_p13, %p647_p7 }
  0x59   : > { %420 = dma.done.wait (!%p278_p3), %s185_s2, 256  }
  0x5a   : > { %422 = vsyncadd (!%p278_p3), %s185_s2, 4294967040  ;;  %s17_s11 = sadd.s32 1, %s445_s11   ;;  %s649_s6 = smov %s429_s7 }
  0x5b   : > { %p14_p6 = scmp.ge.s32.totalorder %s17_s11, 4   ;;  %s650_s7 = smov %s433_s8 }
  0x5c   : > { %s651_s8 = smov %s517_s20  ;;  %s652_s9 = smov %s441_s10 }
  0x5d   : > { %s653_s10 = smov %s655_s14  ;;  %16 = sbr.rel (!%p14_p6) target bundleno = 6 (0x6), region = 70 }
  0x64   :  { %190 = vsyncpa [#allocation3], 1 }
  0x65   :  { %192 = vsyncpa [#allocation3 + $0x1], 1 }
  0x66   :  { %193 = vsyncpa [#allocation4], 1 }
  0x67   :  { %195 = vsyncpa [#allocation4 + $0x1], 1 }

</bundles_post_ra>
